<compile_context>
chip_gen: v7x
topology: tpu7x:2x2x1
jax: 0.10.0
libtpu: 0.0.40
codegen_flags: <defaults>
</compile_context>

<pallas_src>
import functools

import jax
import jax.numpy as jnp
from jax.experimental import pallas as pl
from jax.experimental.pallas import tpu as pltpu

IN_FEATURES = 784
HIDDEN = 64
OUT_CLASSES = 10
OUT_PAD = 128          # lane-dense output slab (10 -> 128 classes)
NEG_BIAS = -1e30       # bias of padded (fake) classes -> exp() == 0 in f32


def _round_up(x, m):
    return (x + m - 1) // m * m


def _cdiv(a, b):
    return (a + b - 1) // b


def mlp_kernel(x_ref,
               w1_ref, b1_ref,
               w2_ref, b2_ref,
               w3_ref, b3_ref,
               w4_ref, b4_ref,
               o_ref):
    # x arrives as f32 straight from HBM (no wrapper pad/cast round trip); cast to bf16 in
    # VMEM so the MXU runs bf16 operands with f32 accumulation.
    x = x_ref[...].astype(jnp.bfloat16)
    # fc1 + relu
    h = jnp.dot(x, w1_ref[...], preferred_element_type=jnp.float32) + b1_ref[...]
    h = jnp.maximum(h, 0.0)
    # fc2 + relu
    h = jnp.dot(h.astype(jnp.bfloat16), w2_ref[...],
                preferred_element_type=jnp.float32) + b2_ref[...]
    h = jnp.maximum(h, 0.0)
    # fc3 + relu
    h = jnp.dot(h.astype(jnp.bfloat16), w3_ref[...],
                preferred_element_type=jnp.float32) + b3_ref[...]
    h = jnp.maximum(h, 0.0)
    # fc4 (padded to 128 output lanes; padded lanes carry a -1e30 bias)
    logits = jnp.dot(h.astype(jnp.bfloat16), w4_ref[...],
                     preferred_element_type=jnp.float32) + b4_ref[...]
    # numerically-stable log_softmax along the last dim (f32 math, bf16 store)
    m = jnp.max(logits, axis=-1, keepdims=True)
    shifted = logits - m
    lse = jnp.log(jnp.sum(jnp.exp(shifted), axis=-1, keepdims=True))
    o_ref[...] = (shifted - lse).astype(o_ref.dtype)


def prepare_params(params):
    """Cast / pad parameters for the kernel:
      - weights (in, out) cast to bf16 (w1 stays at K=784, no K padding needed)
      - w4 zero-padded along N: 10 -> 128; b4 padded with -1e30 so the fake classes
        contribute exactly 0 to the softmax denominator (b4 padding must stay f32)
      - biases stay f32 (elementwise math runs in f32)
    """
    w1 = params["w1"].astype(jnp.bfloat16)
    w2 = params["w2"].astype(jnp.bfloat16)
    w3 = params["w3"].astype(jnp.bfloat16)
    w4 = jnp.pad(params["w4"], ((0, 0), (0, OUT_PAD - OUT_CLASSES))).astype(jnp.bfloat16)
    b1 = params["b1"].astype(jnp.float32)
    b2 = params["b2"].astype(jnp.float32)
    b3 = params["b3"].astype(jnp.float32)
    b4 = jnp.pad(params["b4"].astype(jnp.float32),
                 ((0, 0), (0, OUT_PAD - OUT_CLASSES)),
                 constant_values=NEG_BIAS)
    return w1, b1, w2, b2, w3, b3, w4, b4


@functools.partial(jax.jit, static_argnames=("tb",))
def mlp_forward(x, params, tb=1024):
    """x: (B, 784) float32 -> (B, 10) float32 log-probabilities."""
    B = x.shape[0]
    # Batch tile: big enough to amortize per-grid-step overhead; shrink for tiny batches.
    tb = max(8, min(tb, _round_up(B, 8)))
    # v7x megacore: prefer >=2 "parallel" grid steps when the batch is big enough to split
    # (no measurable effect on v5e/v6e, which have a single TensorCore).
    if _cdiv(B, tb) < 2 and tb >= 16:
        tb = _round_up(_cdiv(tb, 2), 8)
    grid = (_cdiv(B, tb),)
    # Note: if B is not a multiple of tb the final block is partial; Pallas masks the
    # out-of-bounds output rows and the per-row math never mixes rows, so this is safe.

    w1, b1, w2, b2, w3, b3, w4, b4 = prepare_params(params)

    # Weights / biases return the same block at every grid step -> resident in VMEM.
    def resident(shape):
        return pl.BlockSpec(shape, lambda i: (0, 0))

    flops = 2 * B * (IN_FEATURES * HIDDEN + 2 * HIDDEN * HIDDEN + HIDDEN * OUT_PAD)
    bytes_accessed = (B * IN_FEATURES * 4            # x read (f32)
                      + B * OUT_PAD * 2              # output write (bf16)
                      + (w1.size + w2.size + w3.size + w4.size) * 2
                      + (b1.size + b2.size + b3.size + b4.size) * 4)

    # VMEM budget: f32 x double buffer dominates; keep headroom for resident params and
    # f32 intermediates.  Cap at 48 MiB (v7x physical VMEM is 64 MiB; v5e/v6e have 128 MiB).
    vmem_needed = (2 * tb * IN_FEATURES * 4          # x double buffer (f32)
                   + 2 * tb * OUT_PAD * 2            # output double buffer (bf16)
                   + tb * OUT_PAD * 8                # f32 logits/shifted intermediates
                   + (1 << 20))                      # resident params + slack
    vmem_limit = int(min(max(vmem_needed, 16 << 20), 48 << 20))

    out = pl.pallas_call(
        mlp_kernel,
        out_shape=jax.ShapeDtypeStruct((B, OUT_PAD), jnp.bfloat16),
        grid=grid,
        in_specs=[
            pl.BlockSpec((tb, IN_FEATURES), lambda i: (i, 0)),     # x tile: pipelined over batch
            resident((IN_FEATURES, HIDDEN)), resident((1, HIDDEN)),  # fc1
            resident((HIDDEN, HIDDEN)), resident((1, HIDDEN)),       # fc2
            resident((HIDDEN, HIDDEN)), resident((1, HIDDEN)),       # fc3
            resident((HIDDEN, OUT_PAD)), resident((1, OUT_PAD)),     # fc4 (lane-dense)
        ],
        out_specs=pl.BlockSpec((tb, OUT_PAD), lambda i: (i, 0)),
        compiler_params=pltpu.CompilerParams(
            dimension_semantics=("parallel",),   # megacore sharding on v7x; ~no-op elsewhere
            vmem_limit_bytes=vmem_limit,
        ),
        cost_estimate=pl.CostEstimate(
            flops=flops,
            transcendentals=B * (OUT_PAD + 1),   # exps per class + one log per row
            bytes_accessed=bytes_accessed,
        ),
    )(x, w1, b1, w2, b2, w3, b3, w4, b4)

    # Slice the 10 real classes and cast back to f32 in the same tiny XLA pass.
    return out[:, :OUT_CLASSES].astype(jnp.float32)


def init_params(key):
    """Deterministic PyTorch-Linear-style init: U(-1/sqrt(fan_in), 1/sqrt(fan_in)).
    Weights stored as (in_features, out_features) — transposed vs torch."""
    dims = [(IN_FEATURES, HIDDEN), (HIDDEN, HIDDEN), (HIDDEN, HIDDEN), (HIDDEN, OUT_CLASSES)]
    params = {}
    for i, (fan_in, fan_out) in enumerate(dims, start=1):
        key, kw, kb = jax.random.split(key, 3)
        bound = 1.0 / (fan_in ** 0.5)
        params[f"w{i}"] = jax.random.uniform(
            kw, (fan_in, fan_out), jnp.float32, minval=-bound, maxval=bound)
        params[f"b{i}"] = jax.random.uniform(
            kb, (1, fan_out), jnp.float32, minval=-bound, maxval=bound)
    return params


def mlp_reference(x, params):
    """Pure-JAX f32 reference of the PyTorch forward pass."""
    h = jnp.maximum(x @ params["w1"] + params["b1"], 0.0)
    h = jnp.maximum(h @ params["w2"] + params["b2"], 0.0)
    h = jnp.maximum(h @ params["w3"] + params["b3"], 0.0)
    logits = h @ params["w4"] + params["b4"]
    return jax.nn.log_softmax(logits, axis=-1)


if __name__ == "__main__":
    key = jax.random.PRNGKey(0)
    key, kx = jax.random.split(key)
    B = 8
    x = jax.random.normal(kx, (B, IN_FEATURES), jnp.float32)  # flattened 28*28 MNIST images
    params = init_params(key)

    out = mlp_forward(x, params)
    out = jax.block_until_ready(out)

    assert out.shape == (B, OUT_CLASSES)
    assert out.dtype == jnp.float32
    # log_softmax rows should sum to ~1 after exp (bf16 store of log-probs -> ~1% tolerance)
    row_sums = jnp.exp(out).sum(axis=1)
    assert bool(jnp.all(jnp.abs(row_sums - 1.0) < 3e-2))
    # loose check vs f32 reference (bf16 matmul operands + bf16 output store)
    ref = mlp_reference(x, params)
    assert bool(jnp.max(jnp.abs(out - ref)) < 0.1)

    print("KERNEL_OK")
</pallas_src>

<mosaic_0001>
module attributes {stable_mosaic.version = 11 : i64} {
  func.func @mlp_kernel(%arg0: i32, %arg1: memref<8x784xf32, #tpu.memory_space<vmem>>, %arg2: memref<784x64xbf16, #tpu.memory_space<vmem>>, %arg3: memref<1x64xf32, #tpu.memory_space<vmem>>, %arg4: memref<64x64xbf16, #tpu.memory_space<vmem>>, %arg5: memref<1x64xf32, #tpu.memory_space<vmem>>, %arg6: memref<64x64xbf16, #tpu.memory_space<vmem>>, %arg7: memref<1x64xf32, #tpu.memory_space<vmem>>, %arg8: memref<64x128xbf16, #tpu.memory_space<vmem>>, %arg9: memref<1x128xf32, #tpu.memory_space<vmem>>, %arg10: memref<8x128xbf16, #tpu.memory_space<vmem>>) attributes {dimension_semantics = [#tpu.dimension_semantics<parallel>], iteration_bounds = array<i64: 1>, scalar_prefetch = 0 : i64, scratch_operands = 0 : i64, tpu.core_type = #tpu.core_type<tc>, window_params = [{transform_indices = @transform_0, window_bounds = array<i64: 8, 784>}, {pipeline_mode = #tpu.pipeline_mode<synchronous>, transform_indices = @transform_1, window_bounds = array<i64: 784, 64>}, {pipeline_mode = #tpu.pipeline_mode<synchronous>, transform_indices = @transform_2, window_bounds = array<i64: 1, 64>}, {pipeline_mode = #tpu.pipeline_mode<synchronous>, transform_indices = @transform_3, window_bounds = array<i64: 64, 64>}, {pipeline_mode = #tpu.pipeline_mode<synchronous>, transform_indices = @transform_4, window_bounds = array<i64: 1, 64>}, {pipeline_mode = #tpu.pipeline_mode<synchronous>, transform_indices = @transform_5, window_bounds = array<i64: 64, 64>}, {pipeline_mode = #tpu.pipeline_mode<synchronous>, transform_indices = @transform_6, window_bounds = array<i64: 1, 64>}, {pipeline_mode = #tpu.pipeline_mode<synchronous>, transform_indices = @transform_7, window_bounds = array<i64: 64, 128>}, {pipeline_mode = #tpu.pipeline_mode<synchronous>, transform_indices = @transform_8, window_bounds = array<i64: 1, 128>}, {transform_indices = @transform_9, window_bounds = array<i64: 8, 128>}]} {
    %c0 = arith.constant 0 : index
    %c0_0 = arith.constant 0 : index
    %0 = vector.load %arg1[%c0, %c0_0] : memref<8x784xf32, #tpu.memory_space<vmem>>, vector<8x784xf32>
    %1 = arith.truncf %0 : vector<8x784xf32> to vector<8x784xbf16>
    %c0_1 = arith.constant 0 : index
    %c0_2 = arith.constant 0 : index
    %2 = vector.load %arg2[%c0_1, %c0_2] : memref<784x64xbf16, #tpu.memory_space<vmem>>, vector<784x64xbf16>
    %cst = arith.constant dense<0.000000e+00> : vector<8x64xf32>
    %3 = tpu.matmul %1, %2, %cst {dimension_numbers = #tpu.dot_dimension_numbers<[1], [0], [0], [1], [0, 0, 1, 1], [], []>} : vector<8x784xbf16>, vector<784x64xbf16>, vector<8x64xf32> -> vector<8x64xf32>
    %c0_3 = arith.constant 0 : index
    %c0_4 = arith.constant 0 : index
    %4 = vector.load %arg3[%c0_3, %c0_4] : memref<1x64xf32, #tpu.memory_space<vmem>>, vector<1x64xf32>
    %5 = vector.broadcast %4 : vector<1x64xf32> to vector<8x64xf32>
    %6 = arith.addf %3, %5 : vector<8x64xf32>
    %cst_5 = arith.constant 0.000000e+00 : f32
    %7 = vector.broadcast %cst_5 : f32 to vector<8x64xf32>
    %8 = arith.maximumf %6, %7 : vector<8x64xf32>
    %9 = arith.truncf %8 : vector<8x64xf32> to vector<8x64xbf16>
    %c0_6 = arith.constant 0 : index
    %c0_7 = arith.constant 0 : index
    %10 = vector.load %arg4[%c0_6, %c0_7] : memref<64x64xbf16, #tpu.memory_space<vmem>>, vector<64x64xbf16>
    %cst_8 = arith.constant dense<0.000000e+00> : vector<8x64xf32>
    %11 = tpu.matmul %9, %10, %cst_8 {dimension_numbers = #tpu.dot_dimension_numbers<[1], [0], [0], [1], [0, 0, 1, 1], [], []>} : vector<8x64xbf16>, vector<64x64xbf16>, vector<8x64xf32> -> vector<8x64xf32>
    %c0_9 = arith.constant 0 : index
    %c0_10 = arith.constant 0 : index
    %12 = vector.load %arg5[%c0_9, %c0_10] : memref<1x64xf32, #tpu.memory_space<vmem>>, vector<1x64xf32>
    %13 = vector.broadcast %12 : vector<1x64xf32> to vector<8x64xf32>
    %14 = arith.addf %11, %13 : vector<8x64xf32>
    %cst_11 = arith.constant 0.000000e+00 : f32
    %15 = vector.broadcast %cst_11 : f32 to vector<8x64xf32>
    %16 = arith.maximumf %14, %15 : vector<8x64xf32>
    %17 = arith.truncf %16 : vector<8x64xf32> to vector<8x64xbf16>
    %c0_12 = arith.constant 0 : index
    %c0_13 = arith.constant 0 : index
    %18 = vector.load %arg6[%c0_12, %c0_13] : memref<64x64xbf16, #tpu.memory_space<vmem>>, vector<64x64xbf16>
    %cst_14 = arith.constant dense<0.000000e+00> : vector<8x64xf32>
    %19 = tpu.matmul %17, %18, %cst_14 {dimension_numbers = #tpu.dot_dimension_numbers<[1], [0], [0], [1], [0, 0, 1, 1], [], []>} : vector<8x64xbf16>, vector<64x64xbf16>, vector<8x64xf32> -> vector<8x64xf32>
    %c0_15 = arith.constant 0 : index
    %c0_16 = arith.constant 0 : index
    %20 = vector.load %arg7[%c0_15, %c0_16] : memref<1x64xf32, #tpu.memory_space<vmem>>, vector<1x64xf32>
    %21 = vector.broadcast %20 : vector<1x64xf32> to vector<8x64xf32>
    %22 = arith.addf %19, %21 : vector<8x64xf32>
    %cst_17 = arith.constant 0.000000e+00 : f32
    %23 = vector.broadcast %cst_17 : f32 to vector<8x64xf32>
    %24 = arith.maximumf %22, %23 : vector<8x64xf32>
    %25 = arith.truncf %24 : vector<8x64xf32> to vector<8x64xbf16>
    %c0_18 = arith.constant 0 : index
    %c0_19 = arith.constant 0 : index
    %26 = vector.load %arg8[%c0_18, %c0_19] : memref<64x128xbf16, #tpu.memory_space<vmem>>, vector<64x128xbf16>
    %cst_20 = arith.constant dense<0.000000e+00> : vector<8x128xf32>
    %27 = tpu.matmul %25, %26, %cst_20 {dimension_numbers = #tpu.dot_dimension_numbers<[1], [0], [0], [1], [0, 0, 1, 1], [], []>} : vector<8x64xbf16>, vector<64x128xbf16>, vector<8x128xf32> -> vector<8x128xf32>
    %c0_21 = arith.constant 0 : index
    %c0_22 = arith.constant 0 : index
    %28 = vector.load %arg9[%c0_21, %c0_22] : memref<1x128xf32, #tpu.memory_space<vmem>>, vector<1x128xf32>
    %29 = vector.broadcast %28 : vector<1x128xf32> to vector<8x128xf32>
    %30 = arith.addf %27, %29 : vector<8x128xf32>
    %cst_23 = arith.constant dense<0xFF800000> : vector<8xf32>
    %31 = vector.multi_reduction <maximumf>, %30, %cst_23 [1] : vector<8x128xf32> to vector<8xf32>
    %32 = vector.shape_cast %31 : vector<8xf32> to vector<8x1xf32>
    %33 = vector.broadcast %32 : vector<8x1xf32> to vector<8x128xf32>
    %34 = arith.subf %30, %33 : vector<8x128xf32>
    %35 = math.exp %34 : vector<8x128xf32>
    %cst_24 = arith.constant dense<0.000000e+00> : vector<8xf32>
    %36 = vector.multi_reduction <add>, %35, %cst_24 [1] : vector<8x128xf32> to vector<8xf32>
    %37 = vector.shape_cast %36 : vector<8xf32> to vector<8x1xf32>
    %38 = math.log %37 : vector<8x1xf32>
    %39 = vector.broadcast %38 : vector<8x1xf32> to vector<8x128xf32>
    %40 = arith.subf %34, %39 : vector<8x128xf32>
    %41 = arith.truncf %40 : vector<8x128xf32> to vector<8x128xbf16>
    %c0_25 = arith.constant 0 : index
    %c0_26 = arith.constant 0 : index
    %42 = vector.load %arg10[%c0_25, %c0_26] : memref<8x128xbf16, #tpu.memory_space<vmem>>, vector<8x128xbf16>
    tpu.vector_store %arg10[%c0_25, %c0_26], %41 {strides = array<i32>} : memref<8x128xbf16, #tpu.memory_space<vmem>>, vector<8x128xbf16>,
    return
  }
  func.func @transform_0(%arg0: i32) -> (i32, i32) {
    %c0_i32 = arith.constant 0 : i32
    %c0_i32_0 = arith.constant 0 : i32
    return %arg0, %c0_i32 : i32, i32
  }
  func.func @transform_1(%arg0: i32) -> (i32, i32) {
    %c0_i32 = arith.constant 0 : i32
    %c0_i32_0 = arith.constant 0 : i32
    %c0_i32_1 = arith.constant 0 : i32
    return %c0_i32, %c0_i32_0 : i32, i32
  }
  func.func @transform_2(%arg0: i32) -> (i32, i32) {
    %c0_i32 = arith.constant 0 : i32
    %c0_i32_0 = arith.constant 0 : i32
    %c0_i32_1 = arith.constant 0 : i32
    return %c0_i32, %c0_i32_0 : i32, i32
  }
  func.func @transform_3(%arg0: i32) -> (i32, i32) {
    %c0_i32 = arith.constant 0 : i32
    %c0_i32_0 = arith.constant 0 : i32
    %c0_i32_1 = arith.constant 0 : i32
    return %c0_i32, %c0_i32_0 : i32, i32
  }
  func.func @transform_4(%arg0: i32) -> (i32, i32) {
    %c0_i32 = arith.constant 0 : i32
    %c0_i32_0 = arith.constant 0 : i32
    %c0_i32_1 = arith.constant 0 : i32
    return %c0_i32, %c0_i32_0 : i32, i32
  }
  func.func @transform_5(%arg0: i32) -> (i32, i32) {
    %c0_i32 = arith.constant 0 : i32
    %c0_i32_0 = arith.constant 0 : i32
    %c0_i32_1 = arith.constant 0 : i32
    return %c0_i32, %c0_i32_0 : i32, i32
  }
  func.func @transform_6(%arg0: i32) -> (i32, i32) {
    %c0_i32 = arith.constant 0 : i32
    %c0_i32_0 = arith.constant 0 : i32
    %c0_i32_1 = arith.constant 0 : i32
    return %c0_i32, %c0_i32_0 : i32, i32
  }
  func.func @transform_7(%arg0: i32) -> (i32, i32) {
    %c0_i32 = arith.constant 0 : i32
    %c0_i32_0 = arith.constant 0 : i32
    %c0_i32_1 = arith.constant 0 : i32
    return %c0_i32, %c0_i32_0 : i32, i32
  }
  func.func @transform_8(%arg0: i32) -> (i32, i32) {
    %c0_i32 = arith.constant 0 : i32
    %c0_i32_0 = arith.constant 0 : i32
    %c0_i32_1 = arith.constant 0 : i32
    return %c0_i32, %c0_i32_0 : i32, i32
  }
  func.func @transform_9(%arg0: i32) -> (i32, i32) {
    %c0_i32 = arith.constant 0 : i32
    %c0_i32_0 = arith.constant 0 : i32
    return %arg0, %c0_i32 : i32, i32
  }
}

</mosaic_0001>

<bundles_post_ra>
// kernel: mlp_forward.1
= control target key start
LH: loop header
LB: loop body
LE: loop exit
PB: predicated region body
PF: predicated region fallthrough
CT: control target
= control target key end

     0   :  { %v1140_v44 = vmov 0.0   ;;  %vm1141_vm0 = vmmov 0   ;;  %vm446_vm1 = vcmask 130048   ;;  %vm651_vm2 = vcmask 523264   ;;  %s1435_s1 = inlined_call_operand.vmem [shape: bf16[784,64], index: 1, kind: input, shape index: {}]   ;;  %s1436_s0 = inlined_call_operand.vmem [shape: f32[8,784], index: 0, kind: input, shape index: {}]   ;;  %s1437_s3 = inlined_call_operand.vmem [shape: bf16[64,64], index: 3, kind: input, shape index: {}]   ;;  %s1438_s5 = inlined_call_operand.vmem [shape: bf16[64,64], index: 5, kind: input, shape index: {}]   ;;  %s1439_s2 = inlined_call_operand.vmem [shape: f32[1,64], index: 2, kind: input, shape index: {}]   ;;  %s1440_s7 = inlined_call_operand.vmem [shape: bf16[64,128], index: 7, kind: input, shape index: {}]   ;;  %s1441_s4 = inlined_call_operand.vmem [shape: f32[1,64], index: 4, kind: input, shape index: {}]   ;;  %s1442_s6 = inlined_call_operand.vmem [shape: f32[1,64], index: 6, kind: input, shape index: {}]   ;;  %s1443_s8 = inlined_call_operand.vmem [shape: f32[1,128], index: 8, kind: input, shape index: {}]   ;;  %s1444_s9 = inlined_call_operand.vmem [shape: bf16[8,128], index: 9, kind: output, shape index: {}]  }
   0x1   :  { %v1075_v0 = vld [vmem:[%s1435_s1 + $0x40] sm:$0xff]   ;;  %v1079_v4 = vld [vmem:[%s1435_s1 + $0x48] sm:$0xff]   ;;  %v1083_v8 = vld [vmem:[%s1435_s1 + $0x50] sm:$0xff]  }
   0x2   :  { %v1076_v1 = vld [vmem:[%s1435_s1] sm:$0xff]   ;;  %948 = vmatprep.subr.bf16.mxu0 %v1075_v0  ;;  %v1080_v5 = vld [vmem:[%s1435_s1 + $0x8] sm:$0xff]   ;;  %v1084_v9 = vld [vmem:[%s1435_s1 + $0x10] sm:$0xff]  }
   0x3   :  { %v1077_v2 = vld [vmem:[%s1435_s1 + $0xc0] sm:$0xff]   ;;  %949 = vmatpush3.bf16.msra.mxu0 %v1076_v1  ;;  %v1081_v6 = vld [vmem:[%s1435_s1 + $0xc8] sm:$0xff]   ;;  %v1085_v10 = vld [vmem:[%s1435_s1 + $0xd0] sm:$0xff]  }
   0x4   :  { %v1078_v3 = vld [vmem:[%s1435_s1 + $0x80] sm:$0xff]   ;;  %970 = vmatprep.subr.bf16.mxu1 %v1077_v2  ;;  %950 = vmatprep.subr.bf16.mxu0 %v1079_v4  ;;  %v1082_v7 = vld [vmem:[%s1435_s1 + $0x88] sm:$0xff]   ;;  %v1086_v11 = vld [vmem:[%s1435_s1 + $0x90] sm:$0xff]  }
   0x5   :  { %971 = vmatpush3.bf16.msra.mxu1 %v1078_v3  ;;  %v1087_v12 = vld [vmem:[%s1435_s1 + $0x58] sm:$0xff]   ;;  %v1091_v16 = vld [vmem:[%s1435_s1 + $0x60] sm:$0xff]   ;;  %v1095_v20 = vld [vmem:[%s1435_s1 + $0x68] sm:$0xff]  }
   0x6   :  { %972 = vmatprep.subr.bf16.mxu1 %v1081_v6  ;;  %v1088_v13 = vld [vmem:[%s1435_s1 + $0x18] sm:$0xff]   ;;  %v1092_v17 = vld [vmem:[%s1435_s1 + $0x20] sm:$0xff]   ;;  %v1096_v21 = vld [vmem:[%s1435_s1 + $0x28] sm:$0xff]  }
   0x7   :  { %951 = vmatpush3.bf16.msra.mxu0 %v1080_v5  ;;  %v1089_v14 = vld [vmem:[%s1435_s1 + $0xd8] sm:$0xff]   ;;  %v1093_v18 = vld [vmem:[%s1435_s1 + $0xe0] sm:$0xff]   ;;  %v1097_v22 = vld [vmem:[%s1435_s1 + $0xe8] sm:$0xff]  }
   0x8   :  { %952 = vmatprep.subr.bf16.mxu0 %v1083_v8  ;;  %v1090_v15 = vld [vmem:[%s1435_s1 + $0x98] sm:$0xff]   ;;  %v1094_v19 = vld [vmem:[%s1435_s1 + $0xa0] sm:$0xff]   ;;  %v1098_v23 = vld [vmem:[%s1435_s1 + $0xa8] sm:$0xff]  }
   0x9   :  { %973 = vmatpush3.bf16.msra.mxu1 %v1082_v7  ;;  %v1099_v24 = vld [vmem:[%s1435_s1 + $0x70] sm:$0xff]   ;;  %v1103_v28 = vld [vmem:[%s1435_s1 + $0x78] sm:$0xff]   ;;  %v34_v31 = vld [vmem:[%s1436_s0 + $0x8] sm:$0xff] }
   0xa   :  { %974 = vmatprep.subr.bf16.mxu1 %v1085_v10  ;;  %v1100_v25 = vld [vmem:[%s1435_s1 + $0x30] sm:$0xff]   ;;  %v1104_v29 = vld [vmem:[%s1435_s1 + $0x38] sm:$0xff]   ;;  %v41_v32 = vpack.c.bf16 %v34_v31, %v34_v31  ;;  %v33_v34 = vld [vmem:[%s1436_s0] sm:$0xff] }
   0xb   :  { %953 = vmatpush3.bf16.msra.mxu0 %v1084_v9  ;;  %v1101_v26 = vld [vmem:[%s1435_s1 + $0xf0] sm:$0xff]   ;;  %v1105_v30 = vld [vmem:[%s1435_s1 + $0xf8] sm:$0xff]   ;;  %v40_v35 = vpack.c.bf16 %v33_v34, %v33_v34  ;;  %v1107_v36 = vld [vmem:[%s1435_s1 + $0x140] sm:$0xff]  }
   0xc   :  { %954 = vmatprep.subr.bf16.mxu0 %v1087_v12  ;;  %v1102_v27 = vld [vmem:[%s1435_s1 + $0xb0] sm:$0xff]   ;;  %v1106_v33 = vld [vmem:[%s1435_s1 + $0xb8] sm:$0xff]   ;;  %482 = vmatprep.mubr.bf16.mxu0 %v41_v32  ;;  %v1108_v39 = vld [vmem:[%s1435_s1 + $0x100] sm:$0xff]  }
   0xd   :  { %975 = vmatpush3.bf16.msra.mxu1 %v1086_v11  ;;  %v36_v37 = vld [vmem:[%s1436_s0 + $0x18] sm:$0xff]  ;;  %v35_v40 = vld [vmem:[%s1436_s0 + $0x10] sm:$0xff]  ;;  %v1109_v42 = vld [vmem:[%s1435_s1 + $0x148] sm:$0xff]  }
   0xe   :  { %976 = vmatprep.subr.bf16.mxu1 %v1089_v14  ;;  %v43_v38 = vpack.c.bf16 %v36_v37, %v36_v37  ;;  %v42_v41 = vpack.c.bf16 %v35_v40, %v35_v40  ;;  %v1110_v43 = vld [vmem:[%s1435_s1 + $0x108] sm:$0xff]   ;;  %v1111_v45 = vld [vmem:[%s1435_s1 + $0x150] sm:$0xff]   ;;  %v1113_v47 = vld [vmem:[%s1435_s1 + $0x158] sm:$0xff]  }
   0xf   :  { %955 = vmatpush3.bf16.msra.mxu0 %v1088_v13  ;;  %v1112_v46 = vld [vmem:[%s1435_s1 + $0x110] sm:$0xff]   ;;  %v1114_v48 = vld [vmem:[%s1435_s1 + $0x118] sm:$0xff]   ;;  %v1115_v49 = vld [vmem:[%s1435_s1 + $0x160] sm:$0xff]  }
  0x10   :  { %956 = vmatprep.subr.bf16.mxu0 %v1091_v16  ;;  %522 = vmatprep.mubr.bf16.mxu1 %v43_v38  ;;  %v1116_v50 = vld [vmem:[%s1435_s1 + $0x120] sm:$0xff]   ;;  %v1117_v51 = vld [vmem:[%s1435_s1 + $0x168] sm:$0xff]   ;;  %v39_v55 = vld [vmem:[%s1436_s0 + $0x30] sm:$0xff] }
  0x11   :  { %977 = vmatpush3.bf16.msra.mxu1 %v1090_v15  ;;  %v1123_v52 = vld [vmem:[%s1435_s1 + $0x180] sm:$0xff]   ;;  %v38_v53 = vld [vmem:[%s1436_s0 + $0x28] sm:$0xff]  ;;  %v46_v57 = vpack.c.bf16 %v39_v55, %v39_v55  ;;  %v1119_v58 = vld [vmem:[%s1435_s1 + $0x170] sm:$0xff]  }
  0x12   :  { %978 = vmatprep.subr.bf16.mxu1 %v1093_v18  ;;  %v45_v54 = vpack.c.bf16 %v38_v53, %v38_v53  ;;  %v1118_v56 = vld [vmem:[%s1435_s1 + $0x128] sm:$0xff]   ;;  %v1120_v59 = vld [vmem:[%s1435_s1 + $0x130] sm:$0xff]   ;;  %v1121_v60 = vld [vmem:[%s1435_s1 + $0x178] sm:$0xff]  }
  0x13   :  { %957 = vmatpush3.bf16.msra.mxu0 %v1092_v17  ;;  %v1122_v61 = vld [vmem:[%s1435_s1 + $0x138] sm:$0xff]   ;;  %v37_v62 = vld [vmem:[%s1436_s0 + $0x20] sm:$0xff]  ;;  %v1125_v1 = vld [vmem:[%s1437_s3 + $0x8] sm:$0xff]  }
  0x14   :  { %958 = vmatprep.subr.bf16.mxu0 %v1095_v20  ;;  %v44_v63 = vpack.c.bf16 %v37_v62, %v37_v62  ;;  %v1124_v0 = vld [vmem:[%s1437_s3] sm:$0xff]   ;;  %v1126_v2 = vld [vmem:[%s1437_s3 + $0x10] sm:$0xff]   ;;  %v1127_v3 = vld [vmem:[%s1437_s3 + $0x18] sm:$0xff]  }
  0x15   :  { %979 = vmatpush3.bf16.msra.mxu1 %v1094_v19  ;;  %v879_v5 = vld [vmem:[%s1439_s2] ss:$0 sm:$0xff]  ;;  %v1129_v31 = vld [vmem:[%s1438_s5 + $0x8] sm:$0xff]   ;;  %v1130_v32 = vld [vmem:[%s1438_s5 + $0x10] sm:$0xff]  }
  0x16   :  { %980 = vmatprep.subr.bf16.mxu1 %v1097_v22  ;;  %v1132_v34 = vld [vmem:[%s1440_s7] sm:$0xff]  }
  0x17   :  { %959 = vmatpush3.bf16.msra.mxu0 %v1096_v21 }
  0x18   :  { %960 = vmatprep.subr.bf16.mxu0 %v1099_v24 }
  0x19   :  { %981 = vmatpush3.bf16.msra.mxu1 %v1098_v23 }
  0x1a   :  { %982 = vmatprep.subr.bf16.mxu1 %v1101_v26 }
  0x1b   :  { %961 = vmatpush3.bf16.msra.mxu0 %v1100_v25 }
  0x1c   :  { %962 = vmatprep.subr.bf16.mxu0 %v1103_v28 }
  0x1d   :  { %983 = vmatpush3.bf16.msra.mxu1 %v1102_v27 }
  0x1e   :  { %984 = vmatprep.subr.bf16.mxu1 %v1105_v30 }
  0x1f   :  { %963 = vmatpush3.bf16.msra.mxu0 %v1104_v29  ;;  %v1128_v29 = vld [vmem:[%s1438_s5] sm:$0xff]  }
  0x20   :  { %992 = vmatprep.subr.bf16.mxu0 %v1107_v36  ;;  %v930_v36 = vld [vmem:[%s1441_s4] ss:$0 sm:$0xff] }
  0x21   :  { %985 = vmatpush3.bf16.msra.mxu1 %v1106_v33  ;;  %v1131_v33 = vld [vmem:[%s1438_s5 + $0x18] sm:$0xff]  }
  0x22   :  { %483 = vmatmul.mubr.bf16.vlgmr.msra.gmra.mrb[0].mxu0 %v40_v35  ;;  %1031 = vmatprep.subr.bf16.mxu1 %v1140_v44  ;;  %v1133_v35 = vld [vmem:[%s1440_s7 + $0x8] sm:$0xff]  }
  0x23   :  { %993 = vmatpush3.bf16.msra.mxu0 %v1108_v39  ;;  %562 = vmatprep.mubr.bf16.mxu0 %v45_v54 }
  0x24   :  { %523 = vmatmul.mubr.bf16.vlgmr.msra.gmra.mrb[0].mxu1 %v42_v41  ;;  %994 = vmatprep.subr.bf16.mxu0 %v1109_v42 }
  0x25   :  { %1033 = vmatprep.mubr.msk.bf16.mxu1 %vm1141_vm0, %v1140_v44  ;;  %1032 = vmatpush3.bf16.msra.mxu1 %v1123_v52 }
  0x26   :  { %1037 = vmatprep.subr.bf16.mxu1 %v1140_v44 }
  0x27   :  { %995 = vmatpush3.bf16.msra.mxu0 %v1110_v43 }
  0x28   :  { %996 = vmatprep.subr.bf16.mxu0 %v1111_v45  ;;  %v1134_v45 = vld [vmem:[%s1440_s7 + $0x10] sm:$0xff]  }
  0x2b   :  { %997 = vmatpush3.bf16.msra.mxu0 %v1112_v46  ;;  %v1135_v46 = vld [vmem:[%s1440_s7 + $0x18] sm:$0xff]  }
  0x2c   :  { %998 = vmatprep.subr.bf16.mxu0 %v1113_v47  ;;  %1034 = vmatmul.mubr.msk.bf16.vlgmr.msra.gmra.mrb[4].mxu1 %vm446_vm1, %v46_v57  ;;  %v936_v47 = vld [vmem:[%s1442_s6] ss:$0 sm:$0xff] }
  0x2d   :  { %1045 = vmatprep.mubr.msk.bf16.mxu1 %vm1141_vm0, %v1140_v44  ;;  %1038 = vmatpush3.bf16.msra.mxu1 %v1124_v0 }
  0x2e   :  { %1039 = vmatprep.subr.bf16.mxu1 %v1140_v44 }
  0x2f   :  { %999 = vmatpush3.bf16.msra.mxu0 %v1114_v48 }
  0x30   :  { %1000 = vmatprep.subr.bf16.mxu0 %v1115_v49 }
  0x31   :  { %1040 = vmatpush3.bf16.msra.mxu1 %v1125_v1 }
  0x32   :  { %1041 = vmatprep.subr.bf16.mxu1 %v1140_v44 }
  0x33   :  { %1001 = vmatpush3.bf16.msra.mxu0 %v1116_v50 }
  0x34   :  { %1002 = vmatprep.subr.bf16.mxu0 %v1117_v51 }
  0x35   :  { %1042 = vmatpush3.bf16.msra.mxu1 %v1126_v2 }
  0x36   :  { %1043 = vmatprep.subr.bf16.mxu1 %v1140_v44 }
  0x37   :  { %1003 = vmatpush3.bf16.msra.mxu0 %v1118_v56 }
  0x38   :  { %1004 = vmatprep.subr.bf16.mxu0 %v1119_v58 }
  0x39   :  { %1044 = vmatpush3.bf16.msra.mxu1 %v1127_v3 }
  0x3a   :  { %1049 = vmatprep.subr.bf16.mxu1 %v1140_v44 }
  0x3b   :  { %1005 = vmatpush3.bf16.msra.mxu0 %v1120_v59 }
  0x3c   :  { %1006 = vmatprep.subr.bf16.mxu0 %v1121_v60 }
  0x3f   :  { %1007 = vmatpush3.bf16.msra.mxu0 %v1122_v61 }
  0x40   :  { %1061 = vmatprep.subr.bf16.mxu0 %v1140_v44 }
  0x42   :  { %563 = vmatmul.mubr.bf16.vlgmr.msra.gmra.mrb[4].mxu0 %v44_v63 }
  0x43   :  { %1069 = vmatprep.mubr.msk.bf16.mxu0 %vm1141_vm0, %v1140_v44  ;;  %1062 = vmatpush3.bf16.msra.mxu0 %v1132_v34 }
  0x44   :  { %1063 = vmatprep.subr.bf16.mxu0 %v1140_v44 }
  0x47   :  { %1064 = vmatpush3.bf16.msra.mxu0 %v1133_v35 }
  0x48   :  { %1065 = vmatprep.subr.bf16.mxu0 %v1140_v44 }
  0x4b   :  { %1066 = vmatpush3.bf16.msra.mxu0 %v1134_v45 }
  0x4c   :  { %1067 = vmatprep.subr.bf16.mxu0 %v1140_v44 }
  0x4f   :  { %1068 = vmatpush3.bf16.msra.mxu0 %v1135_v46 }
  0xf5   :  { %v964_v4 = vpop.f32.mrb[0].mxu0 }
  0xf6   :  { %v965_v6 = vpop.f32.mrb[1].mxu0 }
  0xf7   :  { %v966_v7 = vadd.f32 %v965_v6, %v964_v4  ;;  %v967_v8 = vpop.f32.mrb[2].mxu0  ;;  %v986_v9 = vpop.f32.mrb[0].mxu1 }
  0xf8   :  { %v968_v10 = vpop.f32.mrb[3].mxu0  ;;  %v987_v12 = vpop.f32.mrb[1].mxu1 }
  0xf9   :  { %v485_v11 = vadd.f32 %v966_v7, %v879_v5  ;;  %v988_v13 = vadd.f32 %v987_v12, %v986_v9  ;;  %v989_v14 = vpop.f32.mrb[2].mxu1 }
  0xfa   :  { %v990_v15 = vpop.f32.mrb[3].mxu1 }
  0xfb   :  { %v525_v16 = vadd.f32 %v988_v13, %v485_v11 }
  0xff   :  { %v604_v17 = vpop.f32.mrb[4].mxu1 }
 0x100   :  { %v1035_v18 = vpop.f32.mrb[5].mxu1 }
 0x101   :  { %v607_v19 = vpop.f32.mrb[6].mxu1 }
 0x102   :  { %v1036_v20 = vpop.f32.mrb[7].mxu1 }
 0x115   :  { %v1008_v21 = vpop.f32.mrb[4].mxu0 }
 0x116   :  { %v1009_v22 = vpop.f32.mrb[5].mxu0 }
 0x117   :  { %v1010_v23 = vadd.f32 %v1009_v22, %v1008_v21  ;;  %v1011_v24 = vpop.f32.mrb[6].mxu0 }
 0x118   :  { %v1012_v25 = vpop.f32.mrb[7].mxu0 }
 0x119   :  { %v565_v26 = vadd.f32 %v1010_v23, %v525_v16 }
 0x11b   :  { %v605_v27 = vadd.f32 %v604_v17, %v565_v26 }
 0x11d   :  { %v610_v28 = vmax.f32 %v605_v27, 0.0 }
 0x11f   :  { %v611_v30 = vpack.c.bf16 %v610_v28, %v610_v28 }
 0x121   :  { %1046 = vmatmul.mubr.msk.bf16.vlgmr.msra.gmra.mrb[8].mxu1 %vm651_vm2, %v611_v30 }
 0x122   :  { %1050 = vmatpush3.bf16.msra.mxu1 %v1128_v29  ;;  %1057 = vmatprep.mubr.msk.bf16.mxu1 %vm1141_vm0, %v1140_v44 }
 0x123   :  { %1051 = vmatprep.subr.bf16.mxu1 %v1140_v44 }
 0x126   :  { %1052 = vmatpush3.bf16.msra.mxu1 %v1129_v31 }
 0x127   :  { %1053 = vmatprep.subr.bf16.mxu1 %v1140_v44 }
 0x12a   :  { %1054 = vmatpush3.bf16.msra.mxu1 %v1130_v32 }
 0x12b   :  { %1055 = vmatprep.subr.bf16.mxu1 %v1140_v44  ;;  %v942_v44 = vld [vmem:[%s1443_s8] ss:$0 sm:$0xff] }
 0x12e   :  { %1056 = vmatpush3.bf16.msra.mxu1 %v1131_v33 }
 0x1f4   :  { %v689_v37 = vpop.f32.mrb[8].mxu1 }
 0x1f5   :  { %v690_v38 = vadd.f32 %v930_v36, %v689_v37  ;;  %v1047_v39 = vpop.f32.mrb[9].mxu1 }
 0x1f6   :  { %v692_v40 = vpop.f32.mrb[10].mxu1 }
 0x1f7   :  { %v695_v41 = vmax.f32 %v690_v38, 0.0  ;;  %v1048_v42 = vpop.f32.mrb[11].mxu1 }
 0x1f9   :  { %v696_v43 = vpack.c.bf16 %v695_v41, %v695_v41 }
 0x1fb   :  { %1058 = vmatmul.mubr.msk.bf16.vlgmr.msra.gmra.mrb[12].mxu1 %vm651_vm2, %v696_v43 }
 0x2ce   :  { %v773_v48 = vpop.f32.mrb[12].mxu1 }
 0x2cf   :  { %v774_v49 = vadd.f32 %v936_v47, %v773_v48  ;;  %v1059_v50 = vpop.f32.mrb[13].mxu1 }
 0x2d0   :  { %v776_v51 = vpop.f32.mrb[14].mxu1 }
 0x2d1   :  { %v779_v52 = vmax.f32 %v774_v49, 0.0  ;;  %v1060_v53 = vpop.f32.mrb[15].mxu1 }
 0x2d3   :  { %v780_v54 = vpack.c.bf16 %v779_v52, %v779_v52 }
 0x2d5   :  { %1070 = vmatmul.mubr.msk.bf16.vlgmr.msra.gmra.mrb[8].mxu0 %vm651_vm2, %v780_v54 }
 0x3a8   :  { %v857_v55 = vpop.f32.mrb[8].mxu0 }
 0x3a9   :  { %v858_v56 = vadd.f32 %v942_v44, %v857_v55  ;;  %v1071_v57 = vpop.f32.mrb[9].mxu0 }
 0x3aa   :  { %v860_v58 = vpop.f32.mrb[10].mxu0 }
 0x3ab   :  { %863 = vmax.xlane.f32.xlu0 %v858_v56  ;;  %v1072_v59 = vpop.f32.mrb[11].mxu0 }
 0x438   :  { %v864_v60 = vpop.xlane.xlu0 %863 }
 0x439   :  { %v865_v61 = vsub.f32 %v858_v56, %v864_v60 }
 0x43b   :  { %v866_v62 = vmul.f32 1.442695, %v865_v61 }
 0x43d   :  { %1136 = vpow2.f32 %v866_v62 }
 0x447   :  { %v1137_v63 = vpop.eup %1136 }
 0x448   :  { %868 = vadd.xlane.f32.xlu0 %v1137_v63 }
 0x4d5   :  { %v869_v0 = vpop.xlane.xlu0 %868 }
 0x4d6   :  { %1138 = vlog2.f32 %v869_v0 }
 0x4e0   :  { %v1139_v1 = vpop.eup %1138 }
 0x4e1   :  { %v871_v2 = vmul.f32 0.6931472, %v1139_v1 }
 0x4e3   :  { %v872_v3 = vsub.f32 %v865_v61, %v871_v2 }
 0x4e5   :  { %v873_v4 = vpack.c.bf16 %v872_v3, %v872_v3 }
 0x4e7   :  { %874 = vst [vmem:[%s1444_s9] sm:$0xf] %v873_v4 }

</bundles_post_ra>
